<compile_context>
chip_gen: v6e
topology: v6e:2x2x1
jax: 0.10.0
libtpu: 0.0.40
codegen_flags: <defaults>
</compile_context>

<pallas_src>
import functools

import numpy as np

import jax
import jax.numpy as jnp
from jax.experimental import pallas as pl
from jax.experimental.pallas import tpu as pltpu


IN_DIMS = 7
OUT_DIMS = 1


def _round_up(x, m):
    return ((x + m - 1) // m) * m


# ---------------------------------------------------------------------------
# Kernel: everything is (features, TB) with batch on lanes.
# ---------------------------------------------------------------------------
def cnn_kernel(xt_ref, w1_ref, b1_ref, w2_ref, b2_ref,
               fc1w_ref, fc1b_ref, fc2w_ref, fc2b_ref, fc3w_ref, fc3b_ref,
               out_ref):
    xt = xt_ref[...]                                                  # (7, TB)

    # conv1 (Conv1d(1, 8, k=2)) fused into a single banded matmul.
    # Output rows are laid out so even/odd time positions occupy rows [0:24]
    # and [24:48] respectively -> MaxPool1d(2,2) is one aligned sublane max.
    h = jnp.maximum(
        jnp.dot(w1_ref[...], xt, preferred_element_type=jnp.float32)
        + b1_ref[...], 0.0)                                           # (48, TB)
    p = jnp.maximum(h[:24, :], h[24:, :])                             # (24, TB)

    # conv2 (Conv1d(8, 6, k=2)) fused into a single banded matmul; output rows
    # s*8 + c (rows 6,7,14,15 are zero padding) -> second pool is aligned too.
    g = jnp.maximum(
        jnp.dot(w2_ref[...], p, preferred_element_type=jnp.float32)
        + b2_ref[...], 0.0)                                           # (16, TB)
    z = jnp.maximum(g[:8, :], g[8:, :])                               # (8, TB)

    # fc1 -> ReLU -> fc2 -> ReLU -> fc3 -> sigmoid
    a1 = jnp.maximum(
        jnp.dot(fc1w_ref[...], z, preferred_element_type=jnp.float32)
        + fc1b_ref[...], 0.0)                                         # (160, TB)
    a2 = jnp.maximum(
        jnp.dot(fc2w_ref[...], a1, preferred_element_type=jnp.float32)
        + fc2b_ref[...], 0.0)                                         # (80, TB)
    a3 = (jnp.dot(fc3w_ref[...], a2, preferred_element_type=jnp.float32)
          + fc3b_ref[...])                                            # (1, TB)
    out_ref[...] = jax.nn.sigmoid(a3)


# ---------------------------------------------------------------------------
# Wrapper
# ---------------------------------------------------------------------------
_WEIGHT_KEYS = ("w1", "b1", "w2", "b2",
                "fc1w", "fc1b", "fc2w", "fc2b", "fc3w", "fc3b")


@functools.partial(jax.jit, static_argnames=("block_b",))
def cnn_forward(x, kp, block_b=512):
    """x: (B, 7) float32; kp: packed kernel params. Returns (B, 1)."""
    B = x.shape[0]
    TB = min(block_b, _round_up(B, 128))          # lane-tile, multiple of 128
    Bp = _round_up(B, TB)

    # Layout plumbing outside the kernel: pad batch + transpose to (7, B_pad).
    xt = jnp.pad(x.astype(jnp.float32), ((0, Bp - B), (0, 0))).T      # (7, Bp)

    weights = [kp[k] for k in _WEIGHT_KEYS]
    w_specs = [pl.BlockSpec(w.shape, lambda i: (0, 0)) for w in weights]

    out = pl.pallas_call(
        cnn_kernel,
        out_shape=jax.ShapeDtypeStruct((1, Bp), jnp.float32),
        grid=(Bp // TB,),
        in_specs=[pl.BlockSpec((IN_DIMS, TB), lambda i: (0, i))] + w_specs,
        out_specs=pl.BlockSpec((1, TB), lambda i: (0, i)),
        compiler_params=pltpu.CompilerParams(
            dimension_semantics=("parallel",)),
    )(xt, *weights)

    return out[0, :B].reshape(B, OUT_DIMS)


# ---------------------------------------------------------------------------
# Parameters: raw PyTorch-shaped params + host-side packing into fused layouts.
# ---------------------------------------------------------------------------
def init_params(key):
    """Deterministic init mimicking PyTorch default uniform(-1/sqrt(fan_in), +)."""
    ks = jax.random.split(key, 10)

    def u(k, shape, fan_in):
        bound = 1.0 / jnp.sqrt(jnp.float32(fan_in))
        return jax.random.uniform(k, shape, jnp.float32, -bound, bound)

    return {
        "conv1_w": u(ks[0], (8, 1, 2), 1 * 2), "conv1_b": u(ks[1], (8,), 1 * 2),
        "conv2_w": u(ks[2], (6, 8, 2), 8 * 2), "conv2_b": u(ks[3], (6,), 8 * 2),
        "fc1_w": u(ks[4], (160, 6), 6),        "fc1_b": u(ks[5], (160,), 6),
        "fc2_w": u(ks[6], (80, 160), 160),     "fc2_b": u(ks[7], (80,), 160),
        "fc3_w": u(ks[8], (OUT_DIMS, 80), 80), "fc3_b": u(ks[9], (OUT_DIMS,), 80),
    }


def pack_params(raw):
    """Build the fused/banded kernel weights host-side (layout work is free here)."""
    c1w = np.asarray(raw["conv1_w"], np.float32)   # (8, 1, 2)
    c1b = np.asarray(raw["conv1_b"], np.float32)   # (8,)
    c2w = np.asarray(raw["conv2_w"], np.float32)   # (6, 8, 2)
    c2b = np.asarray(raw["conv2_b"], np.float32)   # (6,)

    # conv1 fused: row layout L1(t,c) = (t%2)*24 + (t//2)*8 + c  (t=0..5, c=0..7)
    w1 = np.zeros((48, IN_DIMS), np.float32)
    b1 = np.zeros((48, 1), np.float32)
    for t in range(6):
        for c in range(8):
            r = (t % 2) * 24 + (t // 2) * 8 + c
            w1[r, t] = c1w[c, 0, 0]
            w1[r, t + 1] = c1w[c, 0, 1]
            b1[r, 0] = c1b[c]

    # conv2 fused on the pooled layout p[tp*8 + ic]; output rows s*8 + c
    # (rows 6,7,14,15 stay zero so the second pool is 8-aligned).
    w2 = np.zeros((16, 24), np.float32)
    b2 = np.zeros((16, 1), np.float32)
    for s in range(2):
        for c in range(6):
            r = s * 8 + c
            w2[r, s * 8:s * 8 + 8] = c2w[c, :, 0]
            w2[r, (s + 1) * 8:(s + 1) * 8 + 8] = c2w[c, :, 1]
            b2[r, 0] = c2b[c]

    # fc1 padded from (160,6) to (160,8) to consume the padded pooled vector.
    fc1w = np.zeros((160, 8), np.float32)
    fc1w[:, :6] = np.asarray(raw["fc1_w"], np.float32)

    return {
        "w1": jnp.asarray(w1), "b1": jnp.asarray(b1),
        "w2": jnp.asarray(w2), "b2": jnp.asarray(b2),
        "fc1w": jnp.asarray(fc1w),
        "fc1b": jnp.asarray(raw["fc1_b"])[:, None],
        "fc2w": jnp.asarray(raw["fc2_w"]),
        "fc2b": jnp.asarray(raw["fc2_b"])[:, None],
        "fc3w": jnp.asarray(raw["fc3_w"]),
        "fc3b": jnp.asarray(raw["fc3_b"])[:, None],
    }


# ---------------------------------------------------------------------------
# Pure-JAX reference of the PyTorch forward (raw params, torch conventions).
# ---------------------------------------------------------------------------
def ref_forward(x, raw):
    w1, b1 = raw["conv1_w"], raw["conv1_b"]
    w2, b2 = raw["conv2_w"], raw["conv2_b"]
    # conv1 -> (B, 8, 6), ReLU
    h = jnp.stack(
        [x[:, t, None] * w1[None, :, 0, 0] + x[:, t + 1, None] * w1[None, :, 0, 1]
         for t in range(6)], axis=-1) + b1[None, :, None]
    h = jnp.maximum(h, 0.0)
    p = jnp.maximum(h[:, :, 0::2], h[:, :, 1::2])                     # (B, 8, 3)
    # conv2 -> (B, 6, 2), ReLU
    g = jnp.stack(
        [jnp.einsum("bi,ci->bc", p[:, :, s], w2[:, :, 0])
         + jnp.einsum("bi,ci->bc", p[:, :, s + 1], w2[:, :, 1])
         for s in range(2)], axis=-1) + b2[None, :, None]
    g = jnp.maximum(g, 0.0)
    z = jnp.max(g, axis=-1)                                           # (B, 6)
    a1 = jnp.maximum(z @ raw["fc1_w"].T + raw["fc1_b"], 0.0)
    a2 = jnp.maximum(a1 @ raw["fc2_w"].T + raw["fc2_b"], 0.0)
    return jax.nn.sigmoid(a2 @ raw["fc3_w"].T + raw["fc3_b"])


if __name__ == "__main__":
    key = jax.random.PRNGKey(0)
    k_x, k_p, k_x2 = jax.random.split(key, 3)

    raw = init_params(k_p)
    kp = pack_params(raw)

    # Small batch (single grid step).
    B = 8
    x = jax.random.normal(k_x, (B, IN_DIMS), jnp.float32)
    out = jax.block_until_ready(cnn_forward(x, kp))
    ref = jax.block_until_ready(ref_forward(x, raw))
    assert out.shape == (B, OUT_DIMS), out.shape
    assert jnp.allclose(out, ref, atol=1e-5, rtol=1e-5)

    # Larger, non-multiple batch forcing multiple grid steps + padding path.
    B2 = 300
    x2 = jax.random.normal(k_x2, (B2, IN_DIMS), jnp.float32)
    out2 = jax.block_until_ready(cnn_forward(x2, kp, block_b=128))
    ref2 = jax.block_until_ready(ref_forward(x2, raw))
    assert out2.shape == (B2, OUT_DIMS), out2.shape
    assert jnp.allclose(out2, ref2, atol=1e-5, rtol=1e-5)

    print("KERNEL_OK")
</pallas_src>

<mosaic_0001>
module attributes {stable_mosaic.version = 11 : i64} {
  func.func @cnn_kernel(%arg0: i32, %arg1: memref<7x128xf32, #tpu.memory_space<vmem>>, %arg2: memref<48x7xf32, #tpu.memory_space<vmem>>, %arg3: memref<48x1xf32, #tpu.memory_space<vmem>>, %arg4: memref<16x24xf32, #tpu.memory_space<vmem>>, %arg5: memref<16x1xf32, #tpu.memory_space<vmem>>, %arg6: memref<160x8xf32, #tpu.memory_space<vmem>>, %arg7: memref<160x1xf32, #tpu.memory_space<vmem>>, %arg8: memref<80x160xf32, #tpu.memory_space<vmem>>, %arg9: memref<80x1xf32, #tpu.memory_space<vmem>>, %arg10: memref<1x80xf32, #tpu.memory_space<vmem>>, %arg11: memref<1x1xf32, #tpu.memory_space<vmem>>, %arg12: memref<1x128xf32, #tpu.memory_space<vmem>>) attributes {dimension_semantics = [#tpu.dimension_semantics<parallel>], iteration_bounds = array<i64: 1>, scalar_prefetch = 0 : i64, scratch_operands = 0 : i64, tpu.core_type = #tpu.core_type<tc>, window_params = [{transform_indices = @transform_0, window_bounds = array<i64: 7, 128>}, {pipeline_mode = #tpu.pipeline_mode<synchronous>, transform_indices = @transform_1, window_bounds = array<i64: 48, 7>}, {pipeline_mode = #tpu.pipeline_mode<synchronous>, transform_indices = @transform_2, window_bounds = array<i64: 48, 1>}, {pipeline_mode = #tpu.pipeline_mode<synchronous>, transform_indices = @transform_3, window_bounds = array<i64: 16, 24>}, {pipeline_mode = #tpu.pipeline_mode<synchronous>, transform_indices = @transform_4, window_bounds = array<i64: 16, 1>}, {pipeline_mode = #tpu.pipeline_mode<synchronous>, transform_indices = @transform_5, window_bounds = array<i64: 160, 8>}, {pipeline_mode = #tpu.pipeline_mode<synchronous>, transform_indices = @transform_6, window_bounds = array<i64: 160, 1>}, {pipeline_mode = #tpu.pipeline_mode<synchronous>, transform_indices = @transform_7, window_bounds = array<i64: 80, 160>}, {pipeline_mode = #tpu.pipeline_mode<synchronous>, transform_indices = @transform_8, window_bounds = array<i64: 80, 1>}, {pipeline_mode = #tpu.pipeline_mode<synchronous>, transform_indices = @transform_9, window_bounds = array<i64: 1, 80>}, {pipeline_mode = #tpu.pipeline_mode<synchronous>, transform_indices = @transform_10, window_bounds = array<i64: 1, 1>}, {transform_indices = @transform_11, window_bounds = array<i64: 1, 128>}]} {
    %c0 = arith.constant 0 : index
    %c0_0 = arith.constant 0 : index
    %0 = vector.load %arg1[%c0, %c0_0] : memref<7x128xf32, #tpu.memory_space<vmem>>, vector<7x128xf32>
    %c0_1 = arith.constant 0 : index
    %c0_2 = arith.constant 0 : index
    %1 = vector.load %arg2[%c0_1, %c0_2] : memref<48x7xf32, #tpu.memory_space<vmem>>, vector<48x7xf32>
    %cst = arith.constant dense<0.000000e+00> : vector<48x128xf32>
    %2 = tpu.matmul %1, %0, %cst {dimension_numbers = #tpu.dot_dimension_numbers<[1], [0], [0], [1], [0, 0, 1, 1], [], []>} : vector<48x7xf32>, vector<7x128xf32>, vector<48x128xf32> -> vector<48x128xf32>
    %c0_3 = arith.constant 0 : index
    %c0_4 = arith.constant 0 : index
    %3 = vector.load %arg3[%c0_3, %c0_4] : memref<48x1xf32, #tpu.memory_space<vmem>>, vector<48x1xf32>
    %4 = vector.broadcast %3 : vector<48x1xf32> to vector<48x128xf32>
    %5 = arith.addf %2, %4 : vector<48x128xf32>
    %cst_5 = arith.constant 0.000000e+00 : f32
    %6 = vector.broadcast %cst_5 : f32 to vector<48x128xf32>
    %7 = arith.maximumf %5, %6 : vector<48x128xf32>
    %8 = vector.extract_strided_slice %7 {offsets = [0, 0], sizes = [24, 128], strides = [1, 1]} : vector<48x128xf32> to vector<24x128xf32>
    %9 = vector.extract_strided_slice %7 {offsets = [24, 0], sizes = [24, 128], strides = [1, 1]} : vector<48x128xf32> to vector<24x128xf32>
    %10 = arith.maximumf %8, %9 : vector<24x128xf32>
    %c0_6 = arith.constant 0 : index
    %c0_7 = arith.constant 0 : index
    %11 = vector.load %arg4[%c0_6, %c0_7] : memref<16x24xf32, #tpu.memory_space<vmem>>, vector<16x24xf32>
    %cst_8 = arith.constant dense<0.000000e+00> : vector<16x128xf32>
    %12 = tpu.matmul %11, %10, %cst_8 {dimension_numbers = #tpu.dot_dimension_numbers<[1], [0], [0], [1], [0, 0, 1, 1], [], []>} : vector<16x24xf32>, vector<24x128xf32>, vector<16x128xf32> -> vector<16x128xf32>
    %c0_9 = arith.constant 0 : index
    %c0_10 = arith.constant 0 : index
    %13 = vector.load %arg5[%c0_9, %c0_10] : memref<16x1xf32, #tpu.memory_space<vmem>>, vector<16x1xf32>
    %14 = vector.broadcast %13 : vector<16x1xf32> to vector<16x128xf32>
    %15 = arith.addf %12, %14 : vector<16x128xf32>
    %cst_11 = arith.constant 0.000000e+00 : f32
    %16 = vector.broadcast %cst_11 : f32 to vector<16x128xf32>
    %17 = arith.maximumf %15, %16 : vector<16x128xf32>
    %18 = vector.extract_strided_slice %17 {offsets = [0, 0], sizes = [8, 128], strides = [1, 1]} : vector<16x128xf32> to vector<8x128xf32>
    %19 = vector.extract_strided_slice %17 {offsets = [8, 0], sizes = [8, 128], strides = [1, 1]} : vector<16x128xf32> to vector<8x128xf32>
    %20 = arith.maximumf %18, %19 : vector<8x128xf32>
    %c0_12 = arith.constant 0 : index
    %c0_13 = arith.constant 0 : index
    %21 = vector.load %arg6[%c0_12, %c0_13] : memref<160x8xf32, #tpu.memory_space<vmem>>, vector<160x8xf32>
    %cst_14 = arith.constant dense<0.000000e+00> : vector<160x128xf32>
    %22 = tpu.matmul %21, %20, %cst_14 {dimension_numbers = #tpu.dot_dimension_numbers<[1], [0], [0], [1], [0, 0, 1, 1], [], []>} : vector<160x8xf32>, vector<8x128xf32>, vector<160x128xf32> -> vector<160x128xf32>
    %c0_15 = arith.constant 0 : index
    %c0_16 = arith.constant 0 : index
    %23 = vector.load %arg7[%c0_15, %c0_16] : memref<160x1xf32, #tpu.memory_space<vmem>>, vector<160x1xf32>
    %24 = vector.broadcast %23 : vector<160x1xf32> to vector<160x128xf32>
    %25 = arith.addf %22, %24 : vector<160x128xf32>
    %cst_17 = arith.constant 0.000000e+00 : f32
    %26 = vector.broadcast %cst_17 : f32 to vector<160x128xf32>
    %27 = arith.maximumf %25, %26 : vector<160x128xf32>
    %c0_18 = arith.constant 0 : index
    %c0_19 = arith.constant 0 : index
    %28 = vector.load %arg8[%c0_18, %c0_19] : memref<80x160xf32, #tpu.memory_space<vmem>>, vector<80x160xf32>
    %cst_20 = arith.constant dense<0.000000e+00> : vector<80x128xf32>
    %29 = tpu.matmul %28, %27, %cst_20 {dimension_numbers = #tpu.dot_dimension_numbers<[1], [0], [0], [1], [0, 0, 1, 1], [], []>} : vector<80x160xf32>, vector<160x128xf32>, vector<80x128xf32> -> vector<80x128xf32>
    %c0_21 = arith.constant 0 : index
    %c0_22 = arith.constant 0 : index
    %30 = vector.load %arg9[%c0_21, %c0_22] : memref<80x1xf32, #tpu.memory_space<vmem>>, vector<80x1xf32>
    %31 = vector.broadcast %30 : vector<80x1xf32> to vector<80x128xf32>
    %32 = arith.addf %29, %31 : vector<80x128xf32>
    %cst_23 = arith.constant 0.000000e+00 : f32
    %33 = vector.broadcast %cst_23 : f32 to vector<80x128xf32>
    %34 = arith.maximumf %32, %33 : vector<80x128xf32>
    %c0_24 = arith.constant 0 : index
    %c0_25 = arith.constant 0 : index
    %35 = vector.load %arg10[%c0_24, %c0_25] : memref<1x80xf32, #tpu.memory_space<vmem>>, vector<1x80xf32>
    %cst_26 = arith.constant dense<0.000000e+00> : vector<1x128xf32>
    %36 = tpu.matmul %35, %34, %cst_26 {dimension_numbers = #tpu.dot_dimension_numbers<[1], [0], [0], [1], [0, 0, 1, 1], [], []>} : vector<1x80xf32>, vector<80x128xf32>, vector<1x128xf32> -> vector<1x128xf32>
    %c0_27 = arith.constant 0 : index
    %c0_28 = arith.constant 0 : index
    %37 = vector.load %arg11[%c0_27, %c0_28] : memref<1x1xf32, #tpu.memory_space<vmem>>, vector<1x1xf32>
    %38 = vector.broadcast %37 : vector<1x1xf32> to vector<1x128xf32>
    %39 = arith.addf %36, %38 : vector<1x128xf32>
    %40 = arith.negf %39 : vector<1x128xf32>
    %41 = math.exp %40 : vector<1x128xf32>
    %cst_29 = arith.constant 1.000000e+00 : f32
    %42 = vector.broadcast %cst_29 : f32 to vector<1x128xf32>
    %43 = arith.addf %42, %41 : vector<1x128xf32>
    %44 = arith.divf %42, %43 : vector<1x128xf32>
    %c0_30 = arith.constant 0 : index
    %c0_31 = arith.constant 0 : index
    %45 = vector.load %arg12[%c0_30, %c0_31] : memref<1x128xf32, #tpu.memory_space<vmem>>, vector<1x128xf32>
    tpu.vector_store %arg12[%c0_30, %c0_31], %44 {strides = array<i32>} : memref<1x128xf32, #tpu.memory_space<vmem>>, vector<1x128xf32>,
    return
  }
  func.func @transform_0(%arg0: i32) -> (i32, i32) {
    %c0_i32 = arith.constant 0 : i32
    %c0_i32_0 = arith.constant 0 : i32
    return %c0_i32, %arg0 : i32, i32
  }
  func.func @transform_1(%arg0: i32) -> (i32, i32) {
    %c0_i32 = arith.constant 0 : i32
    %c0_i32_0 = arith.constant 0 : i32
    %c0_i32_1 = arith.constant 0 : i32
    return %c0_i32, %c0_i32_0 : i32, i32
  }
  func.func @transform_2(%arg0: i32) -> (i32, i32) {
    %c0_i32 = arith.constant 0 : i32
    %c0_i32_0 = arith.constant 0 : i32
    %c0_i32_1 = arith.constant 0 : i32
    return %c0_i32, %c0_i32_0 : i32, i32
  }
  func.func @transform_3(%arg0: i32) -> (i32, i32) {
    %c0_i32 = arith.constant 0 : i32
    %c0_i32_0 = arith.constant 0 : i32
    %c0_i32_1 = arith.constant 0 : i32
    return %c0_i32, %c0_i32_0 : i32, i32
  }
  func.func @transform_4(%arg0: i32) -> (i32, i32) {
    %c0_i32 = arith.constant 0 : i32
    %c0_i32_0 = arith.constant 0 : i32
    %c0_i32_1 = arith.constant 0 : i32
    return %c0_i32, %c0_i32_0 : i32, i32
  }
  func.func @transform_5(%arg0: i32) -> (i32, i32) {
    %c0_i32 = arith.constant 0 : i32
    %c0_i32_0 = arith.constant 0 : i32
    %c0_i32_1 = arith.constant 0 : i32
    return %c0_i32, %c0_i32_0 : i32, i32
  }
  func.func @transform_6(%arg0: i32) -> (i32, i32) {
    %c0_i32 = arith.constant 0 : i32
    %c0_i32_0 = arith.constant 0 : i32
    %c0_i32_1 = arith.constant 0 : i32
    return %c0_i32, %c0_i32_0 : i32, i32
  }
  func.func @transform_7(%arg0: i32) -> (i32, i32) {
    %c0_i32 = arith.constant 0 : i32
    %c0_i32_0 = arith.constant 0 : i32
    %c0_i32_1 = arith.constant 0 : i32
    return %c0_i32, %c0_i32_0 : i32, i32
  }
  func.func @transform_8(%arg0: i32) -> (i32, i32) {
    %c0_i32 = arith.constant 0 : i32
    %c0_i32_0 = arith.constant 0 : i32
    %c0_i32_1 = arith.constant 0 : i32
    return %c0_i32, %c0_i32_0 : i32, i32
  }
  func.func @transform_9(%arg0: i32) -> (i32, i32) {
    %c0_i32 = arith.constant 0 : i32
    %c0_i32_0 = arith.constant 0 : i32
    %c0_i32_1 = arith.constant 0 : i32
    return %c0_i32, %c0_i32_0 : i32, i32
  }
  func.func @transform_10(%arg0: i32) -> (i32, i32) {
    %c0_i32 = arith.constant 0 : i32
    %c0_i32_0 = arith.constant 0 : i32
    %c0_i32_1 = arith.constant 0 : i32
    return %c0_i32, %c0_i32_0 : i32, i32
  }
  func.func @transform_11(%arg0: i32) -> (i32, i32) {
    %c0_i32 = arith.constant 0 : i32
    %c0_i32_0 = arith.constant 0 : i32
    return %c0_i32, %arg0 : i32, i32
  }
}

</mosaic_0001>

<bundles_post_ra>
// kernel: cnn_forward.1
= control target key start
LH: loop header
LB: loop body
LE: loop exit
PB: predicated region body
PF: predicated region fallthrough
CT: control target
= control target key end

     0   :  { %vm102_vm0 = vcmask 1046528   ;;  %vm83_vm1 = vcmask 56320   ;;  %v1196_v0 = vmov 0   ;;  %vm224_vm2 = vcmask 195584   ;;  %s1612_s2 = inlined_call_operand.vmem [shape: f32[48,1], index: 2, kind: input, shape index: {}]   ;;  %s1613_s0 = inlined_call_operand.vmem [shape: f32[7,128], index: 0, kind: input, shape index: {}]   ;;  %s1614_s1 = inlined_call_operand.vmem [shape: f32[48,7], index: 1, kind: input, shape index: {}]   ;;  %s1615_s10 = inlined_call_operand.<no memory space> [shape: f32[1,1], index: 10, kind: input, shape index: {}]   ;;  %s1616_s4 = inlined_call_operand.vmem [shape: f32[16,1], index: 4, kind: input, shape index: {}]   ;;  %s1617_s6 = inlined_call_operand.vmem [shape: f32[160,1], index: 6, kind: input, shape index: {}]   ;;  %s1618_s8 = inlined_call_operand.vmem [shape: f32[80,1], index: 8, kind: input, shape index: {}]   ;;  %s1619_s3 = inlined_call_operand.vmem [shape: f32[16,24], index: 3, kind: input, shape index: {}]   ;;  %s1620_s5 = inlined_call_operand.vmem [shape: f32[160,8], index: 5, kind: input, shape index: {}]   ;;  %s1621_s7 = inlined_call_operand.vmem [shape: f32[80,160], index: 7, kind: input, shape index: {}]   ;;  %s1622_s9 = inlined_call_operand.vmem [shape: f32[1,80], index: 9, kind: input, shape index: {}]   ;;  %s1623_s11 = inlined_call_operand.vmem [shape: f32[1,128], index: 11, kind: output, shape index: {}]  }
   0x1   :  { %1190 = vset.pattern.permute.xlu0 %v1196_v0  ;;  %v49_v1 = vld [vmem:[%s1612_s2 + $0x10] sm:$0xff]  ;;  %v40_v2 = vld [vmem:[%s1613_s0] sm:$0x7f]  ;;  %1191 = vset.pattern.permute.xlu1 %v1196_v0  ;;  %v16_v4 = vstv %s1615_s10  ;;  %v42_v5 = vld [vmem:[%s1614_s1 + $0x8] sm:$0xff]  ;;  %vm449_vm3 = vcmask 64512   ;;  %vm775_vm4 = vcmask 261120  }
   0x2   :  { %v41_v3 = vld [vmem:[%s1614_s1] sm:$0xff]  ;;  %65 = vperm.xlu0 %1190, %v49_v1   ;;  %1112 = vmatprep.subr.msk.mxu1 %vm102_vm0, %v40_v2  ;;  %v48_v6 = vld [vmem:[%s1612_s2 + $0x8] sm:$0xff]  ;;  %17 = vst [vmem:[#allocation2] sm:$0x1] %v16_v4  ;;  %v43_v8 = vld [vmem:[%s1614_s1 + $0x10] sm:$0xff]  ;;  %vm1198_vm5 = vmmov 0  }
   0x3   :  { %1113 = vmatpush3.msk.msra.mxu1 %vm102_vm0, %v40_v2  ;;  %1114 = vmatprep.mubr.msk.f32.mxu1 %vm83_vm1, %v41_v3  ;;  %v52_v7 = vld [vmem:[%s1612_s2 + $0x28] sm:$0xff]  ;;  %v44_v9 = vld [vmem:[%s1614_s1 + $0x18] sm:$0xff]  ;;  %v51_v10 = vld [vmem:[%s1612_s2 + $0x20] sm:$0xff]  ;;  %vm942_vm6 = vcmask 654336  }
   0x4   :  { %1115 = vmatmul.mubr.msk.f32.vlgmr.msra.gmra.mxu1 %vm83_vm1, %v42_v5  ;;  %60 = vperm.xlu1 %1191, %v48_v6   ;;  %v45_v11 = vld [vmem:[%s1614_s1 + $0x20] sm:$0xff]  ;;  %v46_v13 = vld [vmem:[%s1614_s1 + $0x28] sm:$0xff]  ;;  %v50_v14 = vld [vmem:[%s1612_s2 + $0x18] sm:$0xff] }
   0x5   :  { %1117 = vmatprep.mubr.msk.f32.mxu1 %vm83_vm1, %v43_v8  ;;  %v47_v12 = vld [vmem:[%s1612_s2] sm:$0xff]  ;;  %v213_v16 = vld [vmem:[%s1616_s4 + $0x8] sm:$0xff]  ;;  %v344_v17 = vld [vmem:[%s1617_s6 + $0x78] sm:$0xff] }
   0x6   :  { %80 = vperm.xlu0 %1190, %v52_v7   ;;  %v212_v15 = vld [vmem:[%s1616_s4] sm:$0xff]  ;;  %v343_v18 = vld [vmem:[%s1617_s6 + $0x70] sm:$0xff]  ;;  %v342_v19 = vld [vmem:[%s1617_s6 + $0x68] sm:$0xff] }
   0x7   :  { %v341_v20 = vld [vmem:[%s1617_s6 + $0x60] sm:$0xff]  ;;  %v340_v21 = vld [vmem:[%s1617_s6 + $0x58] sm:$0xff]  ;;  %v339_v22 = vld [vmem:[%s1617_s6 + $0x50] sm:$0xff] }
   0x8   :  { %1118 = vmatmul.mubr.msk.f32.gmra.mxu1 %vm83_vm1, %v44_v9  ;;  %75 = vperm.xlu1 %1191, %v51_v10   ;;  %v338_v23 = vld [vmem:[%s1617_s6 + $0x48] sm:$0xff]  ;;  %v337_v24 = vld [vmem:[%s1617_s6 + $0x40] sm:$0xff]  ;;  %v336_v25 = vld [vmem:[%s1617_s6 + $0x38] sm:$0xff] }
   0x9   :  { %1120 = vmatprep.mubr.msk.f32.mxu1 %vm83_vm1, %v45_v11  ;;  %v335_v26 = vld [vmem:[%s1617_s6 + $0x30] sm:$0xff]  ;;  %v334_v27 = vld [vmem:[%s1617_s6 + $0x28] sm:$0xff]  ;;  %v333_v28 = vld [vmem:[%s1617_s6 + $0x20] sm:$0xff] }
   0xa   :  { %55 = vperm.xlu0 %1190, %v47_v12   ;;  %v332_v29 = vld [vmem:[%s1617_s6 + $0x18] sm:$0xff]  ;;  %v331_v30 = vld [vmem:[%s1617_s6 + $0x10] sm:$0xff]  ;;  %v330_v31 = vld [vmem:[%s1617_s6 + $0x8] sm:$0xff] }
   0xb   :  { %v329_v32 = vld [vmem:[%s1617_s6] sm:$0xff]  ;;  %v348_v33 = vld [vmem:[%s1617_s6 + $0x98] sm:$0xff]  ;;  %v347_v34 = vld [vmem:[%s1617_s6 + $0x90] sm:$0xff] }
   0xc   :  { %1121 = vmatmul.mubr.msk.f32.gmra.mxu1 %vm83_vm1, %v46_v13  ;;  %70 = vperm.xlu1 %1191, %v50_v14   ;;  %v346_v35 = vld [vmem:[%s1617_s6 + $0x88] sm:$0xff]  ;;  %v345_v36 = vld [vmem:[%s1617_s6 + $0x80] sm:$0xff]  ;;  %v722_v39 = vld [vmem:[%s1618_s8 + $0x38] sm:$0xff] }
   0xd   :  { %v724_v37 = vld [vmem:[%s1618_s8 + $0x48] sm:$0xff]  ;;  %v723_v38 = vld [vmem:[%s1618_s8 + $0x40] sm:$0xff]  ;;  %v721_v40 = vld [vmem:[%s1618_s8 + $0x30] sm:$0xff] }
   0xe   :  { %216 = vperm.xlu0 %1190, %v212_v15   ;;  %v720_v41 = vld [vmem:[%s1618_s8 + $0x28] sm:$0xff]  ;;  %v719_v42 = vld [vmem:[%s1618_s8 + $0x20] sm:$0xff]  ;;  %v718_v43 = vld [vmem:[%s1618_s8 + $0x18] sm:$0xff] }
   0xf   :  { %v717_v44 = vld [vmem:[%s1618_s8 + $0x10] sm:$0xff]  ;;  %v716_v45 = vld [vmem:[%s1618_s8 + $0x8] sm:$0xff]  ;;  %v715_v46 = vld [vmem:[%s1618_s8] sm:$0xff] }
  0x10   :  { %221 = vperm.xlu1 %1191, %v213_v16   ;;  %v932_v47 = vld [vmem:[#allocation2] sm:$0x1]  ;;  %v211_v12 = vld [vmem:[%s1619_s3 + $0x8] sm:$0xff] }
  0x11   :  { %v210_v48 = vld [vmem:[%s1619_s3] sm:$0xff] }
  0x12   :  { %426 = vperm.xlu0 %1190, %v344_v17   ;;  %1129 = vmatprep.mubr.msk.f32.mxu1 %vm224_vm2, %v210_v48  ;;  %v309_v13 = vld [vmem:[%s1620_s5] sm:$0xff] }
  0x14   :  { %421 = vperm.xlu1 %1191, %v343_v18  }
  0x16   :  { %416 = vperm.xlu0 %1190, %v342_v19  }
  0x18   :  { %411 = vperm.xlu1 %1191, %v341_v20  }
  0x1a   :  { %406 = vperm.xlu0 %1190, %v340_v21  }
  0x1c   :  { %401 = vperm.xlu1 %1191, %v339_v22  }
  0x1e   :  { %396 = vperm.xlu0 %1190, %v338_v23   ;;  %v310_v23 = vld [vmem:[%s1620_s5 + $0x8] sm:$0xff] }
  0x20   :  { %391 = vperm.xlu1 %1191, %v337_v24   ;;  %v311_v24 = vld [vmem:[%s1620_s5 + $0x10] sm:$0xff] }
  0x22   :  { %386 = vperm.xlu0 %1190, %v336_v25   ;;  %v312_v25 = vld [vmem:[%s1620_s5 + $0x18] sm:$0xff] }
  0x24   :  { %381 = vperm.xlu1 %1191, %v335_v26   ;;  %v313_v26 = vld [vmem:[%s1620_s5 + $0x20] sm:$0xff] }
  0x26   :  { %376 = vperm.xlu0 %1190, %v334_v27   ;;  %v314_v27 = vld [vmem:[%s1620_s5 + $0x28] sm:$0xff] }
  0x28   :  { %371 = vperm.xlu1 %1191, %v333_v28   ;;  %v315_v28 = vld [vmem:[%s1620_s5 + $0x30] sm:$0xff] }
  0x2a   :  { %366 = vperm.xlu0 %1190, %v332_v29   ;;  %v316_v29 = vld [vmem:[%s1620_s5 + $0x38] sm:$0xff] }
  0x2c   :  { %361 = vperm.xlu1 %1191, %v331_v30   ;;  %v317_v30 = vld [vmem:[%s1620_s5 + $0x40] sm:$0xff] }
  0x2e   :  { %356 = vperm.xlu0 %1190, %v330_v31   ;;  %v318_v31 = vld [vmem:[%s1620_s5 + $0x48] sm:$0xff] }
  0x30   :  { %351 = vperm.xlu1 %1191, %v329_v32   ;;  %v319_v32 = vld [vmem:[%s1620_s5 + $0x50] sm:$0xff] }
  0x32   :  { %446 = vperm.xlu0 %1190, %v348_v33   ;;  %v320_v33 = vld [vmem:[%s1620_s5 + $0x58] sm:$0xff] }
  0x34   :  { %441 = vperm.xlu1 %1191, %v347_v34   ;;  %v321_v34 = vld [vmem:[%s1620_s5 + $0x60] sm:$0xff] }
  0x36   :  { %436 = vperm.xlu0 %1190, %v346_v35   ;;  %v322_v35 = vld [vmem:[%s1620_s5 + $0x68] sm:$0xff] }
  0x38   :  { %431 = vperm.xlu1 %1191, %v345_v36   ;;  %v323_v36 = vld [vmem:[%s1620_s5 + $0x70] sm:$0xff] }
  0x3a   :  { %772 = vperm.xlu0 %1190, %v724_v37   ;;  %v324_v37 = vld [vmem:[%s1620_s5 + $0x78] sm:$0xff] }
  0x3c   :  { %767 = vperm.xlu1 %1191, %v723_v38   ;;  %v325_v38 = vld [vmem:[%s1620_s5 + $0x80] sm:$0xff] }
  0x3e   :  { %762 = vperm.xlu0 %1190, %v722_v39   ;;  %v326_v39 = vld [vmem:[%s1620_s5 + $0x88] sm:$0xff] }
  0x40   :  { %757 = vperm.xlu1 %1191, %v721_v40   ;;  %v327_v40 = vld [vmem:[%s1620_s5 + $0x90] sm:$0xff] }
  0x42   :  { %752 = vperm.xlu0 %1190, %v720_v41   ;;  %v328_v41 = vld [vmem:[%s1620_s5 + $0x98] sm:$0xff] }
  0x44   :  { %747 = vperm.xlu1 %1191, %v719_v42   ;;  %v1197_v42 = vmov 0.0  }
  0x45   :  { %806 = vmatprep.subr.mxu0 %v1197_v42 }
  0x46   :  { %742 = vperm.xlu0 %1190, %v718_v43   ;;  %v696_v43 = vld [vmem:[%s1621_s7 + $0x8] sm:$0xff] }
  0x47   :  { %1056 = vmatprep.mubr.msk.f32.mxu0 %vm775_vm4, %v696_v43 }
  0x48   :  { %737 = vperm.xlu1 %1191, %v717_v44  }
  0x4a   :  { %732 = vperm.xlu0 %1190, %v716_v45  }
  0x4c   :  { %727 = vperm.xlu1 %1191, %v715_v46  }
  0x4e   :  { %935 = vperm.xlu0 %1190, %v932_v47  }
  0x7d   :  { %v66_v50 = vpop.permute.xlu0 %65 }
  0x7f   :  { %v61_v49 = vpop.permute.xlu1 %60 }
  0x81   :  { %v81_v54 = vpop.permute.xlu0 %80 }
  0x83   :  { %v76_v52 = vpop.permute.xlu1 %75 }
  0x85   :  { %v56_v63 = vpop.permute.xlu0 %55 }
  0x87   :  { %v71_v58 = vpop.permute.xlu1 %70 }
  0x89   :  { %v217_v17 = vpop.permute.xlu0 %216 }
  0x8b   :  { %v222_v14 = vpop.permute.xlu1 %221 }
  0x8d   :  { %v427_v48 = vpop.permute.xlu0 %426 }
  0xc4   :  { %v1116_v51 = vpop.f32.mrf.mxu1 }
  0xc5   :  { %v178_v60 = vadd.f32 %v1116_v51, %v61_v49 }
  0xc6   :  { %v172_v53 = vpop.f32.mrf.mxu1 }
  0xc7   :  { %v173_v1 = vadd.f32 %v172_v53, %v56_v63  ;;  %v202_v5 = vmax.f32 %v178_v60, 0.0  ;;  %v417_v53 = vpop.permute.xlu0 %416 }
  0xc8   :  { %v1119_v55 = vpop.f32.mrf.mxu1 }
  0xc9   :  { %v188_v61 = vadd.f32 %v1119_v55, %v71_v58  ;;  %v201_v9 = vmax.f32 %v173_v1, 0.0 }
  0xca   :  { %v182_v56 = vpop.f32.mrf.mxu1 }
  0xcb   :  { %v183_v57 = vadd.f32 %v182_v56, %v66_v50  ;;  %v204_v6 = vmax.f32 %v188_v61, 0.0  ;;  %v422_v50 = vpop.permute.xlu1 %421  ;;  %v407_v58 = vpop.permute.xlu0 %406 }
  0xcc   :  { %v1122_v59 = vpop.f32.mrf.mxu1 }
  0xcd   :  { %v198_v62 = vadd.f32 %v1122_v59, %v81_v54  ;;  %v203_v2 = vmax.f32 %v183_v57, 0.0  ;;  %v207_v11 = vmax.f32 %v201_v9, %v204_v6 }
  0xce   :  { %v192_v0 = vpop.f32.mrf.mxu1 }
  0xcf   :  { %v206_v3 = vmax.f32 %v198_v62, 0.0  ;;  %v193_v4 = vadd.f32 %v192_v0, %v76_v52  ;;  %v412_v55 = vpop.permute.xlu1 %411  ;;  %v397_v63 = vpop.permute.xlu0 %396 }
  0xd1   :  { %v209_v7 = vmax.f32 %v203_v2, %v206_v3  ;;  %v205_v8 = vmax.f32 %v193_v4, 0.0 }
  0xd3   :  { %v208_v10 = vmax.f32 %v202_v5, %v205_v8  ;;  %1123 = vmatprep.subr.mxu1 %v209_v7  ;;  %v402_v60 = vpop.permute.xlu1 %401  ;;  %v387_v8 = vpop.permute.xlu0 %386 }
  0xd4   :  { %1124 = vmatpush3.msra.mxu1 %v209_v7 }
  0xd5   :  { %1125 = vmatprep.subr.mxu1 %v208_v10 }
  0xd6   :  { %1126 = vmatpush3.msra.mxu1 %v208_v10 }
  0xd7   :  { %1127 = vmatprep.subr.mxu1 %v207_v11  ;;  %v392_v1 = vpop.permute.xlu1 %391 }
  0xd8   :  { %1128 = vmatpush3.msra.mxu1 %v207_v11 }
  0xd9   :  { %1130 = vmatmul.mubr.msk.f32.vlgmr.msra.gmra.mxu1 %vm224_vm2, %v211_v12 }
  0xda   :  { %1134 = vmatprep.mubr.msk.f32.mxu1 %vm449_vm3, %v309_v13 }
  0xdb   :  { %v382_v11 = vpop.permute.xlu1 %381 }
 0x199   :  { %v1131_v15 = vpop.f32.mrf.mxu1 }
 0x19a   :  { %v303_v16 = vadd.f32 %v1131_v15, %v222_v14 }
 0x19b   :  { %v297_v18 = vpop.f32.mrf.mxu1 }
 0x19c   :  { %v298_v19 = vadd.f32 %v297_v18, %v217_v17  ;;  %v307_v20 = vmax.f32 %v303_v16, 0.0  ;;  %v377_v16 = vpop.permute.xlu0 %376 }
 0x19e   :  { %v306_v21 = vmax.f32 %v298_v19, 0.0  ;;  %v372_v19 = vpop.permute.xlu1 %371 }
 0x1a0   :  { %v308_v22 = vmax.f32 %v306_v21, %v307_v20 }
 0x1a2   :  { %1132 = vmatprep.subr.mxu1 %v308_v22 }
 0x1a3   :  { %1133 = vmatpush3.msra.mxu1 %v308_v22 }
 0x1a4   :  { %1135 = vmatmul.mubr.msk.f32.vlgmr.msra.gmra.mxu1 %vm449_vm3, %v310_v23  ;;  %1164 = vmatprep.subr.mxu1 %v1197_v42 }
 0x1a5   :  { %1137 = vmatprep.mubr.msk.f32.mxu1 %vm449_vm3, %v311_v24  ;;  %v367_v24 = vpop.permute.xlu0 %366 }
 0x1a8   :  { %1138 = vmatmul.mubr.msk.f32.gmra.mxu1 %vm449_vm3, %v312_v25 }
 0x1a9   :  { %1140 = vmatprep.mubr.msk.f32.mxu1 %vm449_vm3, %v313_v26 }
 0x1ac   :  { %1141 = vmatmul.mubr.msk.f32.gmra.mxu1 %vm449_vm3, %v314_v27  ;;  %v362_v27 = vpop.permute.xlu1 %361 }
 0x1ad   :  { %1143 = vmatprep.mubr.msk.f32.mxu1 %vm449_vm3, %v315_v28 }
 0x1b0   :  { %1144 = vmatmul.mubr.msk.f32.gmra.mxu1 %vm449_vm3, %v316_v29 }
 0x1b1   :  { %1146 = vmatprep.mubr.msk.f32.mxu1 %vm449_vm3, %v317_v30 }
 0x1b4   :  { %1147 = vmatmul.mubr.msk.f32.gmra.mxu1 %vm449_vm3, %v318_v31 }
 0x1b5   :  { %1149 = vmatprep.mubr.msk.f32.mxu1 %vm449_vm3, %v319_v32 }
 0x1b8   :  { %1150 = vmatmul.mubr.msk.f32.gmra.mxu1 %vm449_vm3, %v320_v33  ;;  %v357_v33 = vpop.permute.xlu0 %356 }
 0x1b9   :  { %1152 = vmatprep.mubr.msk.f32.mxu1 %vm449_vm3, %v321_v34 }
 0x1bc   :  { %1153 = vmatmul.mubr.msk.f32.gmra.mxu1 %vm449_vm3, %v322_v35 }
 0x1bd   :  { %1155 = vmatprep.mubr.msk.f32.mxu1 %vm449_vm3, %v323_v36 }
 0x1c0   :  { %1156 = vmatmul.mubr.msk.f32.gmra.mxu1 %vm449_vm3, %v324_v37  ;;  %v352_v37 = vpop.permute.xlu1 %351 }
 0x1c1   :  { %1158 = vmatprep.mubr.msk.f32.mxu1 %vm449_vm3, %v325_v38 }
 0x1c4   :  { %1159 = vmatmul.mubr.msk.f32.gmra.mxu1 %vm449_vm3, %v326_v39 }
 0x1c5   :  { %1161 = vmatprep.mubr.msk.f32.mxu1 %vm449_vm3, %v327_v40 }
 0x1c8   :  { %1162 = vmatmul.mubr.msk.f32.gmra.mxu1 %vm449_vm3, %v328_v41 }
 0x1c9   :  { %1184 = vmatprep.mubr.msk.f32.mxu1 %vm1198_vm5, %v1197_v42 }
 0x264   :  { %v1499_v44 = vpop.f32.mrf.mxu1 }
 0x265   :  { %v582_v41 = vadd.f32 %v1499_v44, %v357_v33 }
 0x266   :  { %v1501_v45 = vpop.f32.mrf.mxu1 }
 0x268   :  { %v1503_v46 = vpop.f32.mrf.mxu1 }
 0x269   :  { %v592_v35 = vadd.f32 %v1503_v46, %v367_v24  ;;  %v577_v46 = vadd.f32 %v1501_v45, %v352_v37 }
 0x26a   :  { %v1505_v47 = vpop.f32.mrf.mxu1 }
 0x26b   :  { %v587_v38 = vadd.f32 %v1505_v47, %v362_v27  ;;  %v678_v43 = vmax.f32 %v592_v35, 0.0  ;;  %v676_v47 = vmax.f32 %v582_v41, 0.0 }
 0x26c   :  { %v1142_v49 = vpop.f32.mrf.mxu1 }
 0x26d   :  { %v602_v29 = vadd.f32 %v1142_v49, %v377_v16  ;;  %v677_v49 = vmax.f32 %v587_v38, 0.0 }
 0x26e   :  { %v596_v51 = vpop.f32.mrf.mxu1 }
 0x26f   :  { %v597_v31 = vadd.f32 %v596_v51, %v372_v19  ;;  %v680_v36 = vmax.f32 %v602_v29, 0.0 }
 0x270   :  { %v1145_v52 = vpop.f32.mrf.mxu1 }
 0x271   :  { %v612_v22 = vadd.f32 %v1145_v52, %v387_v8  ;;  %v679_v39 = vmax.f32 %v597_v31, 0.0  ;;  %v708_v8 = vld [vmem:[%s1621_s7 + $0x68] sm:$0xff] }
 0x272   :  { %v606_v54 = vpop.f32.mrf.mxu1 }
 0x273   :  { %v607_v25 = vadd.f32 %v606_v54, %v382_v11  ;;  %v682_v30 = vmax.f32 %v612_v22, 0.0  ;;  %v709_v11 = vld [vmem:[%s1621_s7 + $0x70] sm:$0xff] }
 0x274   :  { %v1148_v56 = vpop.f32.mrf.mxu1 }
 0x275   :  { %v622_v17 = vadd.f32 %v1148_v56, %v397_v63  ;;  %v681_v32 = vmax.f32 %v607_v25, 0.0  ;;  %v697_v63 = vld [vmem:[%s1621_s7 + $0x10] sm:$0xff] }
 0x276   :  { %v616_v57 = vpop.f32.mrf.mxu1 }
 0x277   :  { %v617_v20 = vadd.f32 %v616_v57, %v392_v1  ;;  %v684_v23 = vmax.f32 %v622_v17, 0.0  ;;  %v699_v1 = vld [vmem:[%s1621_s7 + $0x20] sm:$0xff] }
 0x278   :  { %v1151_v59 = vpop.f32.mrf.mxu1 }
 0x279   :  { %v632_v12 = vadd.f32 %v1151_v59, %v407_v58  ;;  %v683_v26 = vmax.f32 %v617_v20, 0.0 }
 0x27a   :  { %v626_v61 = vpop.f32.mrf.mxu1 }
 0x27b   :  { %v627_v14 = vadd.f32 %v626_v61, %v402_v60  ;;  %v686_v18 = vmax.f32 %v632_v12, 0.0  ;;  %v695_v61 = vld [vmem:[%s1621_s7] sm:$0xff]  ;;  %v712_v12 = vld [vmem:[%s1621_s7 + $0x88] sm:$0xff] }
 0x27c   :  { %v1154_v62 = vpop.f32.mrf.mxu1 }
 0x27d   :  { %v642_v5 = vadd.f32 %v1154_v62, %v417_v53  ;;  %v685_v21 = vmax.f32 %v627_v14, 0.0  ;;  %v675_v53 = vmax.f32 %v577_v46, 0.0  ;;  %v698_v62 = vld [vmem:[%s1621_s7 + $0x18] sm:$0xff] }
 0x27e   :  { %v636_v0 = vpop.f32.mrf.mxu1  ;;  %v714_v14 = vld [vmem:[%s1621_s7 + $0x98] sm:$0xff] }
 0x27f   :  { %v637_v9 = vadd.f32 %v636_v0, %v412_v55  ;;  %v688_v13 = vmax.f32 %v642_v5, 0.0  ;;  %v700_v0 = vld [vmem:[%s1621_s7 + $0x28] sm:$0xff]  ;;  %v703_v5 = vld [vmem:[%s1621_s7 + $0x40] sm:$0xff] }
 0x280   :  { %v1157_v2 = vpop.f32.mrf.mxu1 }
 0x281   :  { %v652_v3 = vadd.f32 %v1157_v2, %v427_v48  ;;  %v687_v15 = vmax.f32 %v637_v9, 0.0  ;;  %v447_v48 = vpop.permute.xlu0 %446  ;;  %v702_v2 = vld [vmem:[%s1621_s7 + $0x38] sm:$0xff]  ;;  %v707_v9 = vld [vmem:[%s1621_s7 + $0x60] sm:$0xff] }
 0x282   :  { %v646_v4 = vpop.f32.mrf.mxu1 }
 0x283   :  { %v690_v6 = vmax.f32 %v652_v3, 0.0  ;;  %v647_v7 = vadd.f32 %v646_v4, %v422_v50  ;;  %v442_v50 = vpop.permute.xlu1 %441  ;;  %v701_v3 = vld [vmem:[%s1621_s7 + $0x30] sm:$0xff]  ;;  %v704_v4 = vld [vmem:[%s1621_s7 + $0x48] sm:$0xff] }
 0x284   :  { %v1160_v28 = vpop.f32.mrf.mxu1 }
 0x285   :  { %v689_v10 = vmax.f32 %v647_v7, 0.0  ;;  %807 = vmatpush1.msra.mxu0 %v690_v6  ;;  %v437_v54 = vpop.permute.xlu0 %436  ;;  %v706_v6 = vld [vmem:[%s1621_s7 + $0x58] sm:$0xff]  ;;  %v705_v7 = vld [vmem:[%s1621_s7 + $0x50] sm:$0xff] }
 0x286   :  { %808 = vmatprep.subr.mxu0 %v1197_v42  ;;  %v656_v34 = vpop.f32.mrf.mxu1  ;;  %v662_v55 = vadd.f32 %v1160_v28, %v437_v54 }
 0x287   :  { %809 = vmatpush1.msra.mxu0 %v689_v10  ;;  %v432_v45 = vpop.permute.xlu1 %431  ;;  %v710_v10 = vld [vmem:[%s1621_s7 + $0x78] sm:$0xff] }
 0x288   :  { %810 = vmatprep.subr.mxu0 %v1197_v42  ;;  %v1163_v40 = vpop.f32.mrf.mxu1  ;;  %v657_v57 = vadd.f32 %v656_v34, %v432_v45  ;;  %v692_v59 = vmax.f32 %v662_v55, 0.0 }
 0x289   :  { %811 = vmatpush1.msra.mxu0 %v688_v13  ;;  %v672_v52 = vadd.f32 %v1163_v40, %v447_v48  ;;  %v711_v13 = vld [vmem:[%s1621_s7 + $0x80] sm:$0xff]  ;;  %v773_v29 = vpop.permute.xlu0 %772 }
 0x28a   :  { %812 = vmatprep.subr.mxu0 %v1197_v42  ;;  %v666_v51 = vpop.f32.mrf.mxu1  ;;  %v691_v60 = vmax.f32 %v657_v57, 0.0 }
 0x28b   :  { %813 = vmatpush1.msra.mxu0 %v687_v15  ;;  %v667_v44 = vadd.f32 %v666_v51, %v442_v50  ;;  %v694_v56 = vmax.f32 %v672_v52, 0.0  ;;  %v713_v15 = vld [vmem:[%s1621_s7 + $0x90] sm:$0xff]  ;;  %v768_v31 = vpop.permute.xlu1 %767 }
 0x28c   :  { %814 = vmatprep.subr.mxu0 %v1197_v42 }
 0x28d   :  { %815 = vmatpush1.msra.mxu0 %v686_v18  ;;  %v693_v58 = vmax.f32 %v667_v44, 0.0  ;;  %v763_v34 = vpop.permute.xlu0 %762 }
 0x28e   :  { %816 = vmatprep.subr.mxu0 %v1197_v42 }
 0x28f   :  { %817 = vmatpush1.msra.mxu0 %v685_v21 }
 0x290   :  { %818 = vmatprep.subr.mxu0 %v1197_v42 }
 0x291   :  { %819 = vmatpush1.msra.mxu0 %v684_v23  ;;  %v753_v41 = vpop.permute.xlu0 %752 }
 0x292   :  { %820 = vmatprep.subr.mxu0 %v1197_v42 }
 0x293   :  { %821 = vmatpush1.msra.mxu0 %v683_v26 }
 0x294   :  { %822 = vmatprep.subr.mxu0 %v1197_v42 }
 0x295   :  { %823 = vmatpush1.msra.mxu0 %v682_v30 }
 0x296   :  { %824 = vmatprep.subr.mxu0 %v1197_v42 }
 0x297   :  { %825 = vmatpush1.msra.mxu0 %v681_v32 }
 0x298   :  { %826 = vmatprep.subr.mxu0 %v1197_v42 }
 0x299   :  { %827 = vmatpush1.msra.mxu0 %v680_v36  ;;  %v758_v36 = vpop.permute.xlu1 %757 }
 0x29a   :  { %828 = vmatprep.subr.mxu0 %v1197_v42 }
 0x29b   :  { %829 = vmatpush1.msra.mxu0 %v679_v39 }
 0x29c   :  { %830 = vmatprep.subr.mxu0 %v1197_v42 }
 0x29d   :  { %831 = vmatpush1.msra.mxu0 %v678_v43 }
 0x29e   :  { %832 = vmatprep.subr.mxu0 %v1197_v42 }
 0x29f   :  { %833 = vmatpush1.msra.mxu0 %v677_v49  ;;  %v748_v49 = vpop.permute.xlu1 %747 }
 0x2a0   :  { %834 = vmatprep.subr.mxu0 %v1197_v42 }
 0x2a1   :  { %835 = vmatpush1.msra.mxu0 %v676_v47 }
 0x2a2   :  { %836 = vmatprep.subr.mxu0 %v1197_v42 }
 0x2a3   :  { %837 = vmatpush1.msra.mxu0 %v675_v53  ;;  %v743_v53 = vpop.permute.xlu0 %742  ;;  %v738_v55 = vpop.permute.xlu1 %737 }
 0x2a4   :  { %862 = vmatprep.subr.mxu0 %v1197_v42 }
 0x2a5   :  { %863 = vmatpush2.msra.mxu0 %v694_v56 }
 0x2a6   :  { %864 = vmatprep.subr.mxu0 %v1197_v42 }
 0x2a7   :  { %865 = vmatpush2.msra.mxu0 %v693_v58 }
 0x2a8   :  { %866 = vmatprep.subr.mxu0 %v1197_v42 }
 0x2a9   :  { %867 = vmatpush2.msra.mxu0 %v692_v59  ;;  %v733_v59 = vpop.permute.xlu0 %732 }
 0x2aa   :  { %868 = vmatprep.subr.mxu0 %v1197_v42 }
 0x2ab   :  { %869 = vmatpush2.msra.mxu0 %v691_v60 }
 0x2ac   :  { %871 = vmatmul.mubr.f32.vlgmr.msra.gmra.mxu0 %v695_v61 }
 0x2ad   :  { %1057 = vmatprep.mubr.msk.f32.mxu0 %vm775_vm4, %v698_v62  ;;  %v728_v62 = vpop.permute.xlu1 %727 }
 0x2b0   :  { %876 = vmatmul.mubr.f32.gmra.mxu0 %v697_v63 }
 0x2b1   :  { %1058 = vmatprep.mubr.msk.f32.mxu0 %vm775_vm4, %v700_v0 }
 0x2b4   :  { %881 = vmatmul.mubr.f32.gmra.mxu0 %v699_v1 }
 0x2b5   :  { %1059 = vmatprep.mubr.msk.f32.mxu0 %vm775_vm4, %v702_v2 }
 0x2b8   :  { %886 = vmatmul.mubr.f32.gmra.mxu0 %v701_v3  ;;  %v931_v3 = vld [vmem:[%s1622_s9] sm:$0x1] }
 0x2b9   :  { %1060 = vmatprep.mubr.msk.f32.mxu0 %vm775_vm4, %v704_v4  ;;  %v938_v4 = vlaneseq }
 0x2bc   :  { %891 = vmatmul.mubr.f32.gmra.mxu0 %v703_v5  ;;  %v939_v5 = vshrl.u32 %v938_v4, 7 }
 0x2bd   :  { %1061 = vmatprep.mubr.msk.f32.mxu0 %vm775_vm4, %v706_v6 }
 0x2be   :  { %v940_v6 = vsub.s32 0, %v939_v5 }
 0x2c0   :  { %896 = vmatmul.mubr.f32.gmra.mxu0 %v705_v7  ;;  %v936_v7 = vpop.permute.xlu0 %935 }
 0x2c1   :  { %1062 = vmatprep.mubr.msk.f32.mxu0 %vm775_vm4, %v708_v8  ;;  %v941_v8 = vrot.slane %v936_v7, %v940_v6 }
 0x2c4   :  { %901 = vmatmul.mubr.f32.gmra.mxu0 %v707_v9 }
 0x2c5   :  { %1063 = vmatprep.mubr.msk.f32.mxu0 %vm775_vm4, %v710_v10 }
 0x2c8   :  { %906 = vmatmul.mubr.f32.gmra.mxu0 %v709_v11 }
 0x2c9   :  { %1064 = vmatprep.mubr.msk.f32.mxu0 %vm775_vm4, %v712_v12 }
 0x2cc   :  { %911 = vmatmul.mubr.f32.gmra.mxu0 %v711_v13 }
 0x2cd   :  { %1065 = vmatprep.mubr.msk.f32.mxu0 %vm775_vm4, %v714_v14 }
 0x2d0   :  { %916 = vmatmul.mubr.f32.gmra.mxu0 %v713_v15 }
 0x36c   :  { %v872_v16 = vpop.f32.mrf.mxu0 }
 0x36d   :  { %v873_v63 = vadd.f32 %v872_v16, %v728_v62 }
 0x36e   :  { %v874_v17 = vpop.f32.mrf.mxu0 }
 0x36f   :  { %v921_v2 = vmax.f32 %v873_v63, 0.0 }
 0x370   :  { %v877_v18 = vpop.f32.mrf.mxu0 }
 0x371   :  { %v878_v60 = vadd.f32 %v877_v18, %v733_v59 }
 0x372   :  { %v879_v19 = vpop.f32.mrf.mxu0 }
 0x373   :  { %v922_v1 = vmax.f32 %v878_v60, 0.0 }
 0x374   :  { %v882_v20 = vpop.f32.mrf.mxu0 }
 0x375   :  { %v883_v57 = vadd.f32 %v882_v20, %v738_v55 }
 0x376   :  { %v884_v21 = vpop.f32.mrf.mxu0 }
 0x377   :  { %v923_v0 = vmax.f32 %v883_v57, 0.0 }
 0x378   :  { %v887_v22 = vpop.f32.mrf.mxu0 }
 0x379   :  { %v888_v56 = vadd.f32 %v887_v22, %v743_v53 }
 0x37a   :  { %v889_v23 = vpop.f32.mrf.mxu0 }
 0x37b   :  { %v924_v61 = vmax.f32 %v888_v56, 0.0 }
 0x37c   :  { %v892_v24 = vpop.f32.mrf.mxu0 }
 0x37d   :  { %v893_v44 = vadd.f32 %v892_v24, %v748_v49 }
 0x37e   :  { %v894_v25 = vpop.f32.mrf.mxu0 }
 0x37f   :  { %v925_v58 = vmax.f32 %v893_v44, 0.0 }
 0x380   :  { %v897_v26 = vpop.f32.mrf.mxu0 }
 0x381   :  { %v898_v47 = vadd.f32 %v897_v26, %v753_v41 }
 0x382   :  { %v899_v27 = vpop.f32.mrf.mxu0 }
 0x383   :  { %v926_v45 = vmax.f32 %v898_v47, 0.0 }
 0x384   :  { %v902_v28 = vpop.f32.mrf.mxu0 }
 0x385   :  { %v903_v50 = vadd.f32 %v902_v28, %v758_v36 }
 0x386   :  { %v904_v30 = vpop.f32.mrf.mxu0 }
 0x387   :  { %v927_v54 = vmax.f32 %v903_v50, 0.0 }
 0x388   :  { %v907_v32 = vpop.f32.mrf.mxu0 }
 0x389   :  { %v908_v48 = vadd.f32 %v907_v32, %v763_v34 }
 0x38a   :  { %v909_v33 = vpop.f32.mrf.mxu0 }
 0x38b   :  { %v928_v52 = vmax.f32 %v908_v48, 0.0 }
 0x38c   :  { %v912_v35 = vpop.f32.mrf.mxu0 }
 0x38d   :  { %v913_v39 = vadd.f32 %v912_v35, %v768_v31 }
 0x38e   :  { %v914_v37 = vpop.f32.mrf.mxu0 }
 0x38f   :  { %v929_v51 = vmax.f32 %v913_v39, 0.0 }
 0x390   :  { %v917_v38 = vpop.f32.mrf.mxu0 }
 0x391   :  { %v918_v40 = vadd.f32 %v917_v38, %v773_v29 }
 0x392   :  { %v919_v43 = vpop.f32.mrf.mxu0 }
 0x393   :  { %v930_v46 = vmax.f32 %v918_v40, 0.0 }
 0x395   :  { %1165 = vmatpush3.msra.mxu1 %v930_v46 }
 0x396   :  { %1166 = vmatprep.subr.mxu1 %v1197_v42 }
 0x397   :  { %1167 = vmatpush3.msra.mxu1 %v929_v51 }
 0x398   :  { %1168 = vmatprep.subr.mxu1 %v1197_v42 }
 0x399   :  { %1169 = vmatpush3.msra.mxu1 %v928_v52 }
 0x39a   :  { %1170 = vmatprep.subr.mxu1 %v1197_v42 }
 0x39b   :  { %1171 = vmatpush3.msra.mxu1 %v927_v54 }
 0x39c   :  { %1172 = vmatprep.subr.mxu1 %v1197_v42 }
 0x39d   :  { %1173 = vmatpush3.msra.mxu1 %v926_v45 }
 0x39e   :  { %1174 = vmatprep.subr.mxu1 %v1197_v42 }
 0x39f   :  { %1175 = vmatpush3.msra.mxu1 %v925_v58 }
 0x3a0   :  { %1176 = vmatprep.subr.mxu1 %v1197_v42 }
 0x3a1   :  { %1177 = vmatpush3.msra.mxu1 %v924_v61 }
 0x3a2   :  { %1178 = vmatprep.subr.mxu1 %v1197_v42 }
 0x3a3   :  { %1179 = vmatpush3.msra.mxu1 %v923_v0 }
 0x3a4   :  { %1180 = vmatprep.subr.mxu1 %v1197_v42 }
 0x3a5   :  { %1181 = vmatpush3.msra.mxu1 %v922_v1 }
 0x3a6   :  { %1182 = vmatprep.subr.mxu1 %v1197_v42 }
 0x3a7   :  { %1183 = vmatpush3.msra.mxu1 %v921_v2 }
 0x3a8   :  { %1185 = vmatmul.mubr.msk.f32.vlgmr.msra.gmra.mxu1 %vm942_vm6, %v931_v3 }
 0x468   :  { %v1012_v9 = vpop.f32.mrf.mxu1 }
 0x469   :  { %v1013_v10 = vadd.f32 %v1012_v9, %v941_v8 }
 0x46a   :  { %v1186_v11 = vpop.f32.mrf.mxu1 }
 0x46b   :  { %v1067_v12 = vmul.f32 -1.442695, %v1013_v10 }
 0x46d   :  { %1192 = vpow2.f32 %v1067_v12 }
 0x47a   :  { %v1193_v13 = vpop.eup %1192 }
 0x47b   :  { %v1019_v14 = vadd.f32 1.0, %v1193_v13 }
 0x47d   :  { %1194 = vrcp.f32 %v1019_v14 }
 0x48a   :  { %v1195_v15 = vpop.eup %1194 }
 0x48b   :  { %1022 = vst [vmem:[%s1623_s11] sm:$0x1] %v1195_v15 }

</bundles_post_ra>
